<compile_context>
chip_gen: v5e
topology: v5e:2x2
jax: 0.10.0
libtpu: 0.0.40
codegen_flags: <defaults>
</compile_context>

<pallas_src>
import jax
import jax.numpy as jnp
import numpy as np
from jax.experimental import pallas as pl
from jax.experimental.pallas import tpu as pltpu


# -----------------------------------------------------------------------------
# Kernel: one batch block x one time chunk per grid step
# -----------------------------------------------------------------------------
def lstm_disc_kernel(ml_ref, x_ref, len_ref, wih_ref, whh_ref, b_ref,
                     last_ref, xw_sc, h_sc, c_sc):
    """
    ml_ref   : (1,)  SMEM   max(cap_len) (scalar prefetch)
    x_ref    : (Tc, Bb, E)  time-major embeddings for this (chunk, batch block)
    len_ref  : (Bb, 1)      int32 caption lengths
    wih_ref  : (E, 4H)      input->gates weight, gate order (i, f, o, g)
    whh_ref  : (H, 4H)      hidden->gates weight, gate order (i, f, o, g)
    b_ref    : (1, 4H)      b_ih + b_hh, gate order (i, f, o, g), f32
    last_ref : (Bb, H)      OUTPUT: hidden state at t == cap_len - 1
    xw_sc    : (Tc*Bb, 4H)  VMEM scratch: fused input projection for the chunk
    h_sc,c_sc: (Bb, H)      VMEM scratch: recurrent state carried across chunks
    """
    Tc, Bb, E = x_ref.shape
    G = whh_ref.shape[1]
    H = G // 4
    tc = pl.program_id(1)

    @pl.when(tc == 0)
    def _():
        h_sc[...] = jnp.zeros_like(h_sc)
        c_sc[...] = jnp.zeros_like(c_sc)
        last_ref[...] = jnp.zeros_like(last_ref)

    chunk_start = tc * Tc
    max_len = ml_ref[0]

    @pl.when(chunk_start < max_len)          # skip fully-padded time chunks
    def _():
        # ---- fused input projection: ONE matmul + ONE contiguous store ----
        x2d = x_ref[...].reshape(Tc * Bb, E)
        xw_sc[...] = (jnp.dot(x2d, wih_ref[...],
                              preferred_element_type=jnp.float32)
                      + b_ref[...])

        whh = whh_ref[...]
        lens_m1 = len_ref[...] - 1           # (Bb, 1), loaded once per chunk

        def step(t, carry):
            h, c, last = carry
            row = pl.multiple_of(t * Bb, Bb)
            # exactly one matmul on the serial path
            gates = (jnp.dot(h.astype(whh.dtype), whh,
                             preferred_element_type=jnp.float32)
                     + xw_sc[pl.ds(row, Bb), :])              # (Bb, 4H) f32
            # gates are laid out (i, f, o | g): sigmoid on 3H lanes, tanh on H
            sig = jax.nn.sigmoid(gates[:, :3 * H])
            g_g = jnp.tanh(gates[:, 3 * H:])
            i_g = sig[:, 0 * H:1 * H]
            f_g = sig[:, 1 * H:2 * H]
            o_g = sig[:, 2 * H:3 * H]
            c_new = f_g * c + i_g * g_g
            h_new = o_g * jnp.tanh(c_new)
            # capture hidden state at global step == cap_len - 1 per row
            last_new = jnp.where(lens_m1 == chunk_start + t, h_new, last)
            return h_new, c_new, last_new

        h, c, last = jax.lax.fori_loop(
            0, Tc, step, (h_sc[...], c_sc[...], last_ref[...]), unroll=True)
        h_sc[...] = h
        c_sc[...] = c
        last_ref[...] = last


# -----------------------------------------------------------------------------
# Wrapper
# -----------------------------------------------------------------------------
def discriminator_lstm_forward(cap, cap_len, params, *, batch_block=None,
                               t_chunk=8, compute_dtype=jnp.float32):
    """cap: (B, T) int32 token ids; cap_len: (B,) int32 lengths in [1, T].

    compute_dtype: use jnp.bfloat16 on v6e/v7x for production sizes (f32 accum
    is kept via preferred_element_type; h/c/gates stay f32).
    """
    embed = params["embed"]                                   # (V, E)
    H = params["w_hh"].shape[0]
    E = embed.shape[1]
    G = 4 * H

    # Gate permutation (i, f, g, o) -> (i, f, o, g) so sigmoid/tanh each cover
    # a contiguous lane range in the kernel.
    def permute_gates(w):
        wr = w.reshape(w.shape[:-1] + (4, H))
        wr = wr[..., jnp.array([0, 1, 3, 2]), :]
        return wr.reshape(w.shape)

    w_ih = permute_gates(params["w_ih"].astype(jnp.float32)).astype(compute_dtype)
    w_hh = permute_gates(params["w_hh"].astype(jnp.float32)).astype(compute_dtype)
    b = permute_gates((params["b_ih"] + params["b_hh"]).astype(jnp.float32))

    # weight_norm(dim=0): w = g * v / ||v|| per output row
    v = params["cls_v"]                                       # (2, H)
    g = params["cls_g"]                                       # (2,)
    row_norm = jnp.sqrt(jnp.sum(v * v, axis=1))
    w_cls = (v * (g / row_norm)[:, None]).T.astype(jnp.float32)  # (H, 2)
    b_cls = params["cls_b"].astype(jnp.float32)                  # (2,)

    B, T = cap.shape

    # batch block: aim for MXU-height blocks when B is large; must divide B.
    if batch_block is None:
        if B <= 256:
            batch_block = B
        else:
            batch_block = next(
                (bb for bb in (256, 128, 64, 32, 16, 8) if B % bb == 0), B)
    assert B % batch_block == 0
    nb = B // batch_block

    # time chunk: bounded VMEM residency; must divide T.
    t_chunk = min(int(t_chunk), T)
    while T % t_chunk:
        t_chunk -= 1
    nt = T // t_chunk

    x = jnp.transpose(embed[cap], (1, 0, 2)).astype(compute_dtype)   # (T, B, E)
    lens = cap_len.astype(jnp.int32).reshape(B, 1)
    max_len = jnp.max(cap_len).astype(jnp.int32).reshape(1)

    itemsize = jnp.dtype(compute_dtype).itemsize
    vmem_est = (2 * t_chunk * batch_block * E * itemsize        # x (dbl-buffered)
                + 2 * (E + H) * G * itemsize                    # weights
                + t_chunk * batch_block * G * 4                 # xw scratch
                + 6 * batch_block * H * 4                       # h, c, out
                + (2 << 20))
    vmem_limit = int(min(max(2 * vmem_est, 16 * 2 ** 20), 64 * 2 ** 20))

    grid_spec = pltpu.PrefetchScalarGridSpec(
        num_scalar_prefetch=1,                     # max_len -> SMEM
        grid=(nb, nt),                             # (batch blocks, time chunks)
        in_specs=[
            pl.BlockSpec((t_chunk, batch_block, E), lambda i, tc, ml: (tc, i, 0)),
            pl.BlockSpec((batch_block, 1), lambda i, tc, ml: (i, 0)),
            pl.BlockSpec((E, G), lambda i, tc, ml: (0, 0)),
            pl.BlockSpec((H, G), lambda i, tc, ml: (0, 0)),
            pl.BlockSpec((1, G), lambda i, tc, ml: (0, 0)),
        ],
        out_specs=pl.BlockSpec((batch_block, H), lambda i, tc, ml: (i, 0)),
        scratch_shapes=[
            pltpu.VMEM((t_chunk * batch_block, G), jnp.float32),  # xw
            pltpu.VMEM((batch_block, H), jnp.float32),            # h
            pltpu.VMEM((batch_block, H), jnp.float32),            # c
        ],
    )

    last = pl.pallas_call(
        lstm_disc_kernel,
        out_shape=jax.ShapeDtypeStruct((B, H), jnp.float32),
        grid_spec=grid_spec,
        compiler_params=pltpu.CompilerParams(
            dimension_semantics=("parallel", "arbitrary"),
            vmem_limit_bytes=vmem_limit),
    )(max_len, x, lens, w_ih, w_hh, b.reshape(1, G))

    # Tiny lane-sparse (H, 2) classifier runs in plain XLA (review item 11).
    # TODO(synk): nn.Dropout(0.5) treated as eval-mode identity.
    return last @ w_cls + b_cls


# -----------------------------------------------------------------------------
# Pure-JAX reference (eval-mode dropout == identity), PyTorch gate order i,f,g,o
# -----------------------------------------------------------------------------
def reference_forward(cap, cap_len, params):
    embed = params["embed"]
    w_ih, w_hh = params["w_ih"], params["w_hh"]
    b = params["b_ih"] + params["b_hh"]
    v, g = params["cls_v"], params["cls_g"]
    row_norm = jnp.sqrt(jnp.sum(v * v, axis=1))
    w_cls = (v * (g / row_norm)[:, None]).T
    b_cls = params["cls_b"]

    x = embed[cap].astype(jnp.float32)   # (B, T, E)
    B, T, _ = x.shape
    H = w_hh.shape[0]
    h = jnp.zeros((B, H), jnp.float32)
    c = jnp.zeros((B, H), jnp.float32)
    hs = []
    for t in range(T):
        gates = x[:, t, :] @ w_ih + h @ w_hh + b
        i_g = jax.nn.sigmoid(gates[:, :H])
        f_g = jax.nn.sigmoid(gates[:, H:2 * H])
        g_g = jnp.tanh(gates[:, 2 * H:3 * H])
        o_g = jax.nn.sigmoid(gates[:, 3 * H:])
        c = f_g * c + i_g * g_g
        h = o_g * jnp.tanh(c)
        hs.append(h)
    hs = jnp.stack(hs, axis=1)                                   # (B, T, H)
    last = hs[jnp.arange(B), cap_len - 1]                        # (B, H)
    return last @ w_cls + b_cls


# -----------------------------------------------------------------------------
# Main
# -----------------------------------------------------------------------------
if __name__ == "__main__":
    # Small shapes consistent with the module (embed_dim == hidden_dim).
    VOCAB, E, H = 50, 32, 32
    B, T = 8, 8

    key = jax.random.PRNGKey(0)
    keys = jax.random.split(key, 10)
    k = 1.0 / np.sqrt(H)
    params = {
        "embed": jax.random.uniform(keys[0], (VOCAB, E), jnp.float32, -0.1, 0.1),
        # LSTMCell params stored transposed vs PyTorch: (in_dim, 4H), gate order i,f,g,o
        "w_ih": jax.random.uniform(keys[1], (E, 4 * H), jnp.float32, -k, k),
        "w_hh": jax.random.uniform(keys[2], (H, 4 * H), jnp.float32, -k, k),
        "b_ih": jax.random.uniform(keys[3], (4 * H,), jnp.float32, -k, k),
        "b_hh": jax.random.uniform(keys[4], (4 * H,), jnp.float32, -k, k),
        # weight_norm(Linear(H, 2)) params: direction v, magnitude g, bias
        "cls_v": jax.random.uniform(keys[5], (2, H), jnp.float32, -k, k),
        "cls_g": jax.random.uniform(keys[6], (2,), jnp.float32, 0.5, 1.5),
        "cls_b": jax.random.uniform(keys[7], (2,), jnp.float32, -k, k),
    }

    cap = jax.random.randint(keys[8], (B, T), 0, VOCAB, dtype=jnp.int32)
    cap_len = jax.random.randint(keys[9], (B,), 1, T + 1, dtype=jnp.int32)

    # t_chunk=4 exercises the multi-chunk path (nt=2) + max_len chunk skipping.
    logits = discriminator_lstm_forward(cap, cap_len, params, t_chunk=4)
    logits = jax.block_until_ready(logits)

    ref = reference_forward(cap, cap_len, params)
    np.testing.assert_allclose(np.asarray(logits), np.asarray(ref),
                               rtol=1e-4, atol=1e-4)

    print("KERNEL_OK")
</pallas_src>

<mosaic_0001>
module attributes {stable_mosaic.version = 11 : i64} {
  func.func @lstm_disc_kernel(%arg0: i32, %arg1: i32, %arg2: memref<1xi32, #tpu.memory_space<smem>>, %arg3: memref<4x8x32xf32, #tpu.memory_space<vmem>>, %arg4: memref<8x1xi32, #tpu.memory_space<vmem>>, %arg5: memref<32x128xf32, #tpu.memory_space<vmem>>, %arg6: memref<32x128xf32, #tpu.memory_space<vmem>>, %arg7: memref<1x128xf32, #tpu.memory_space<vmem>>, %arg8: memref<8x32xf32, #tpu.memory_space<vmem>>, %arg9: memref<32x128xf32, #tpu.memory_space<vmem>>, %arg10: memref<8x32xf32, #tpu.memory_space<vmem>>, %arg11: memref<8x32xf32, #tpu.memory_space<vmem>>) attributes {dimension_semantics = [#tpu.dimension_semantics<parallel>, #tpu.dimension_semantics<arbitrary>], iteration_bounds = array<i64: 1, 2>, scalar_prefetch = 1 : i64, scratch_operands = 3 : i64, tpu.core_type = #tpu.core_type<tc>, window_params = [{transform_indices = @transform_0, window_bounds = array<i64: 4, 8, 32>}, {transform_indices = @transform_1, window_bounds = array<i64: 8, 1>}, {pipeline_mode = #tpu.pipeline_mode<synchronous>, transform_indices = @transform_2, window_bounds = array<i64: 32, 128>}, {pipeline_mode = #tpu.pipeline_mode<synchronous>, transform_indices = @transform_3, window_bounds = array<i64: 32, 128>}, {pipeline_mode = #tpu.pipeline_mode<synchronous>, transform_indices = @transform_4, window_bounds = array<i64: 1, 128>}, {transform_indices = @transform_5, window_bounds = array<i64: 8, 32>}]} {
    %c0_i32 = arith.constant 0 : i32
    %0 = arith.cmpi eq, %arg1, %c0_i32 : i32
    %1 = arith.extui %0 : i1 to i32
    %c0_i32_0 = arith.constant 0 : i32
    %2 = arith.cmpi ne, %1, %c0_i32_0 : i32
    scf.if %2 {
      %cst = arith.constant 0.000000e+00 : f32
      %8 = vector.broadcast %cst : f32 to vector<8x32xf32>
      %c0_2 = arith.constant 0 : index
      %c0_3 = arith.constant 0 : index
      %9 = vector.load %arg10[%c0_2, %c0_3] : memref<8x32xf32, #tpu.memory_space<vmem>>, vector<8x32xf32>
      tpu.vector_store %arg10[%c0_2, %c0_3], %8 {strides = array<i32>} : memref<8x32xf32, #tpu.memory_space<vmem>>, vector<8x32xf32>,
      %cst_4 = arith.constant 0.000000e+00 : f32
      %10 = vector.broadcast %cst_4 : f32 to vector<8x32xf32>
      %c0_5 = arith.constant 0 : index
      %c0_6 = arith.constant 0 : index
      %11 = vector.load %arg11[%c0_5, %c0_6] : memref<8x32xf32, #tpu.memory_space<vmem>>, vector<8x32xf32>
      tpu.vector_store %arg11[%c0_5, %c0_6], %10 {strides = array<i32>} : memref<8x32xf32, #tpu.memory_space<vmem>>, vector<8x32xf32>,
      %cst_7 = arith.constant 0.000000e+00 : f32
      %12 = vector.broadcast %cst_7 : f32 to vector<8x32xf32>
      %c0_8 = arith.constant 0 : index
      %c0_9 = arith.constant 0 : index
      %13 = vector.load %arg8[%c0_8, %c0_9] : memref<8x32xf32, #tpu.memory_space<vmem>>, vector<8x32xf32>
      tpu.vector_store %arg8[%c0_8, %c0_9], %12 {strides = array<i32>} : memref<8x32xf32, #tpu.memory_space<vmem>>, vector<8x32xf32>,
    } else {
    }
    %c4_i32 = arith.constant 4 : i32
    %3 = arith.muli %arg1, %c4_i32 : i32
    %c0 = arith.constant 0 : index
    %4 = memref.load %arg2[%c0] : memref<1xi32, #tpu.memory_space<smem>>
    %5 = arith.cmpi slt, %3, %4 : i32
    %6 = arith.extui %5 : i1 to i32
    %c0_i32_1 = arith.constant 0 : i32
    %7 = arith.cmpi ne, %6, %c0_i32_1 : i32
    scf.if %7 {
      %c0_2 = arith.constant 0 : index
      %c0_3 = arith.constant 0 : index
      %c0_4 = arith.constant 0 : index
      %8 = vector.load %arg3[%c0_2, %c0_3, %c0_4] : memref<4x8x32xf32, #tpu.memory_space<vmem>>, vector<4x8x32xf32>
      %9 = vector.shape_cast %8 : vector<4x8x32xf32> to vector<32x32xf32>
      %c0_5 = arith.constant 0 : index
      %c0_6 = arith.constant 0 : index
      %10 = vector.load %arg5[%c0_5, %c0_6] : memref<32x128xf32, #tpu.memory_space<vmem>>, vector<32x128xf32>
      %cst = arith.constant dense<0.000000e+00> : vector<32x128xf32>
      %11 = tpu.matmul %9, %10, %cst {dimension_numbers = #tpu.dot_dimension_numbers<[1], [0], [0], [1], [0, 0, 1, 1], [], []>} : vector<32x32xf32>, vector<32x128xf32>, vector<32x128xf32> -> vector<32x128xf32>
      %c0_7 = arith.constant 0 : index
      %c0_8 = arith.constant 0 : index
      %12 = vector.load %arg7[%c0_7, %c0_8] : memref<1x128xf32, #tpu.memory_space<vmem>>, vector<1x128xf32>
      %13 = vector.broadcast %12 : vector<1x128xf32> to vector<32x128xf32>
      %14 = arith.addf %11, %13 : vector<32x128xf32>
      %c0_9 = arith.constant 0 : index
      %c0_10 = arith.constant 0 : index
      %15 = vector.load %arg9[%c0_9, %c0_10] : memref<32x128xf32, #tpu.memory_space<vmem>>, vector<32x128xf32>
      tpu.vector_store %arg9[%c0_9, %c0_10], %14 {strides = array<i32>} : memref<32x128xf32, #tpu.memory_space<vmem>>, vector<32x128xf32>,
      %c0_11 = arith.constant 0 : index
      %c0_12 = arith.constant 0 : index
      %16 = vector.load %arg6[%c0_11, %c0_12] : memref<32x128xf32, #tpu.memory_space<vmem>>, vector<32x128xf32>
      %c0_13 = arith.constant 0 : index
      %c0_14 = arith.constant 0 : index
      %17 = vector.load %arg4[%c0_13, %c0_14] : memref<8x1xi32, #tpu.memory_space<vmem>>, vector<8x1xi32>
      %c1_i32 = arith.constant 1 : i32
      %18 = vector.broadcast %c1_i32 : i32 to vector<8x1xi32>
      %19 = arith.subi %17, %18 : vector<8x1xi32>
      %c0_15 = arith.constant 0 : index
      %c0_16 = arith.constant 0 : index
      %20 = vector.load %arg10[%c0_15, %c0_16] : memref<8x32xf32, #tpu.memory_space<vmem>>, vector<8x32xf32>
      %c0_17 = arith.constant 0 : index
      %c0_18 = arith.constant 0 : index
      %21 = vector.load %arg11[%c0_17, %c0_18] : memref<8x32xf32, #tpu.memory_space<vmem>>, vector<8x32xf32>
      %c0_19 = arith.constant 0 : index
      %c0_20 = arith.constant 0 : index
      %22 = vector.load %arg8[%c0_19, %c0_20] : memref<8x32xf32, #tpu.memory_space<vmem>>, vector<8x32xf32>
      %c0_i32_21 = arith.constant 0 : i32
      %c8_i32 = arith.constant 8 : i32
      %23 = arith.muli %c0_i32_21, %c8_i32 : i32
      %24 = tpu.assume_multiple %23, 8 : i32
      %cst_22 = arith.constant dense<0.000000e+00> : vector<8x128xf32>
      %25 = tpu.matmul %20, %16, %cst_22 {dimension_numbers = #tpu.dot_dimension_numbers<[1], [0], [0], [1], [0, 0, 1, 1], [], []>} : vector<8x32xf32>, vector<32x128xf32>, vector<8x128xf32> -> vector<8x128xf32>
      %26 = arith.index_cast %24 : i32 to index
      %c0_23 = arith.constant 0 : index
      %27 = vector.load %arg9[%26, %c0_23] : memref<32x128xf32, #tpu.memory_space<vmem>>, vector<8x128xf32>
      %28 = arith.addf %25, %27 : vector<8x128xf32>
      %29 = vector.extract_strided_slice %28 {offsets = [0, 0], sizes = [8, 96], strides = [1, 1]} : vector<8x128xf32> to vector<8x96xf32>
      %30 = arith.negf %29 : vector<8x96xf32>
      %31 = math.exp %30 : vector<8x96xf32>
      %cst_24 = arith.constant 1.000000e+00 : f32
      %32 = vector.broadcast %cst_24 : f32 to vector<8x96xf32>
      %33 = arith.addf %32, %31 : vector<8x96xf32>
      %34 = arith.divf %32, %33 : vector<8x96xf32>
      %35 = vector.extract_strided_slice %28 {offsets = [0, 96], sizes = [8, 32], strides = [1, 1]} : vector<8x128xf32> to vector<8x32xf32>
      %36 = math.tanh %35 : vector<8x32xf32>
      %37 = vector.extract_strided_slice %34 {offsets = [0, 0], sizes = [8, 32], strides = [1, 1]} : vector<8x96xf32> to vector<8x32xf32>
      %38 = vector.extract_strided_slice %34 {offsets = [0, 32], sizes = [8, 32], strides = [1, 1]} : vector<8x96xf32> to vector<8x32xf32>
      %39 = vector.extract_strided_slice %34 {offsets = [0, 64], sizes = [8, 32], strides = [1, 1]} : vector<8x96xf32> to vector<8x32xf32>
      %40 = arith.mulf %38, %21 : vector<8x32xf32>
      %41 = arith.mulf %37, %36 : vector<8x32xf32>
      %42 = arith.addf %40, %41 : vector<8x32xf32>
      %43 = math.tanh %42 : vector<8x32xf32>
      %44 = arith.mulf %39, %43 : vector<8x32xf32>
      %45 = arith.addi %3, %c0_i32_21 : i32
      %46 = vector.broadcast %45 : i32 to vector<8x1xi32>
      %47 = arith.cmpi eq, %19, %46 : vector<8x1xi32>
      %48 = vector.shape_cast %47 : vector<8x1xi1> to vector<8x1xi1>
      %49 = vector.broadcast %48 : vector<8x1xi1> to vector<8x32xi1>
      %50 = arith.select %49, %44, %22 : vector<8x32xi1>, vector<8x32xf32>
      %c1_i32_25 = arith.constant 1 : i32
      %c8_i32_26 = arith.constant 8 : i32
      %51 = arith.muli %c1_i32_25, %c8_i32_26 : i32
      %52 = tpu.assume_multiple %51, 8 : i32
      %cst_27 = arith.constant dense<0.000000e+00> : vector<8x128xf32>
      %53 = tpu.matmul %44, %16, %cst_27 {dimension_numbers = #tpu.dot_dimension_numbers<[1], [0], [0], [1], [0, 0, 1, 1], [], []>} : vector<8x32xf32>, vector<32x128xf32>, vector<8x128xf32> -> vector<8x128xf32>
      %54 = arith.index_cast %52 : i32 to index
      %c0_28 = arith.constant 0 : index
      %55 = vector.load %arg9[%54, %c0_28] : memref<32x128xf32, #tpu.memory_space<vmem>>, vector<8x128xf32>
      %56 = arith.addf %53, %55 : vector<8x128xf32>
      %57 = vector.extract_strided_slice %56 {offsets = [0, 0], sizes = [8, 96], strides = [1, 1]} : vector<8x128xf32> to vector<8x96xf32>
      %58 = arith.negf %57 : vector<8x96xf32>
      %59 = math.exp %58 : vector<8x96xf32>
      %cst_29 = arith.constant 1.000000e+00 : f32
      %60 = vector.broadcast %cst_29 : f32 to vector<8x96xf32>
      %61 = arith.addf %60, %59 : vector<8x96xf32>
      %62 = arith.divf %60, %61 : vector<8x96xf32>
      %63 = vector.extract_strided_slice %56 {offsets = [0, 96], sizes = [8, 32], strides = [1, 1]} : vector<8x128xf32> to vector<8x32xf32>
      %64 = math.tanh %63 : vector<8x32xf32>
      %65 = vector.extract_strided_slice %62 {offsets = [0, 0], sizes = [8, 32], strides = [1, 1]} : vector<8x96xf32> to vector<8x32xf32>
      %66 = vector.extract_strided_slice %62 {offsets = [0, 32], sizes = [8, 32], strides = [1, 1]} : vector<8x96xf32> to vector<8x32xf32>
      %67 = vector.extract_strided_slice %62 {offsets = [0, 64], sizes = [8, 32], strides = [1, 1]} : vector<8x96xf32> to vector<8x32xf32>
      %68 = arith.mulf %66, %42 : vector<8x32xf32>
      %69 = arith.mulf %65, %64 : vector<8x32xf32>
      %70 = arith.addf %68, %69 : vector<8x32xf32>
      %71 = math.tanh %70 : vector<8x32xf32>
      %72 = arith.mulf %67, %71 : vector<8x32xf32>
      %73 = arith.addi %3, %c1_i32_25 : i32
      %74 = vector.broadcast %73 : i32 to vector<8x1xi32>
      %75 = arith.cmpi eq, %19, %74 : vector<8x1xi32>
      %76 = vector.shape_cast %75 : vector<8x1xi1> to vector<8x1xi1>
      %77 = vector.broadcast %76 : vector<8x1xi1> to vector<8x32xi1>
      %78 = arith.select %77, %72, %50 : vector<8x32xi1>, vector<8x32xf32>
      %c2_i32 = arith.constant 2 : i32
      %c8_i32_30 = arith.constant 8 : i32
      %79 = arith.muli %c2_i32, %c8_i32_30 : i32
      %80 = tpu.assume_multiple %79, 8 : i32
      %cst_31 = arith.constant dense<0.000000e+00> : vector<8x128xf32>
      %81 = tpu.matmul %72, %16, %cst_31 {dimension_numbers = #tpu.dot_dimension_numbers<[1], [0], [0], [1], [0, 0, 1, 1], [], []>} : vector<8x32xf32>, vector<32x128xf32>, vector<8x128xf32> -> vector<8x128xf32>
      %82 = arith.index_cast %80 : i32 to index
      %c0_32 = arith.constant 0 : index
      %83 = vector.load %arg9[%82, %c0_32] : memref<32x128xf32, #tpu.memory_space<vmem>>, vector<8x128xf32>
      %84 = arith.addf %81, %83 : vector<8x128xf32>
      %85 = vector.extract_strided_slice %84 {offsets = [0, 0], sizes = [8, 96], strides = [1, 1]} : vector<8x128xf32> to vector<8x96xf32>
      %86 = arith.negf %85 : vector<8x96xf32>
      %87 = math.exp %86 : vector<8x96xf32>
      %cst_33 = arith.constant 1.000000e+00 : f32
      %88 = vector.broadcast %cst_33 : f32 to vector<8x96xf32>
      %89 = arith.addf %88, %87 : vector<8x96xf32>
      %90 = arith.divf %88, %89 : vector<8x96xf32>
      %91 = vector.extract_strided_slice %84 {offsets = [0, 96], sizes = [8, 32], strides = [1, 1]} : vector<8x128xf32> to vector<8x32xf32>
      %92 = math.tanh %91 : vector<8x32xf32>
      %93 = vector.extract_strided_slice %90 {offsets = [0, 0], sizes = [8, 32], strides = [1, 1]} : vector<8x96xf32> to vector<8x32xf32>
      %94 = vector.extract_strided_slice %90 {offsets = [0, 32], sizes = [8, 32], strides = [1, 1]} : vector<8x96xf32> to vector<8x32xf32>
      %95 = vector.extract_strided_slice %90 {offsets = [0, 64], sizes = [8, 32], strides = [1, 1]} : vector<8x96xf32> to vector<8x32xf32>
      %96 = arith.mulf %94, %70 : vector<8x32xf32>
      %97 = arith.mulf %93, %92 : vector<8x32xf32>
      %98 = arith.addf %96, %97 : vector<8x32xf32>
      %99 = math.tanh %98 : vector<8x32xf32>
      %100 = arith.mulf %95, %99 : vector<8x32xf32>
      %101 = arith.addi %3, %c2_i32 : i32
      %102 = vector.broadcast %101 : i32 to vector<8x1xi32>
      %103 = arith.cmpi eq, %19, %102 : vector<8x1xi32>
      %104 = vector.shape_cast %103 : vector<8x1xi1> to vector<8x1xi1>
      %105 = vector.broadcast %104 : vector<8x1xi1> to vector<8x32xi1>
      %106 = arith.select %105, %100, %78 : vector<8x32xi1>, vector<8x32xf32>
      %c3_i32 = arith.constant 3 : i32
      %c8_i32_34 = arith.constant 8 : i32
      %107 = arith.muli %c3_i32, %c8_i32_34 : i32
      %108 = tpu.assume_multiple %107, 8 : i32
      %cst_35 = arith.constant dense<0.000000e+00> : vector<8x128xf32>
      %109 = tpu.matmul %100, %16, %cst_35 {dimension_numbers = #tpu.dot_dimension_numbers<[1], [0], [0], [1], [0, 0, 1, 1], [], []>} : vector<8x32xf32>, vector<32x128xf32>, vector<8x128xf32> -> vector<8x128xf32>
      %110 = arith.index_cast %108 : i32 to index
      %c0_36 = arith.constant 0 : index
      %111 = vector.load %arg9[%110, %c0_36] : memref<32x128xf32, #tpu.memory_space<vmem>>, vector<8x128xf32>
      %112 = arith.addf %109, %111 : vector<8x128xf32>
      %113 = vector.extract_strided_slice %112 {offsets = [0, 0], sizes = [8, 96], strides = [1, 1]} : vector<8x128xf32> to vector<8x96xf32>
      %114 = arith.negf %113 : vector<8x96xf32>
      %115 = math.exp %114 : vector<8x96xf32>
      %cst_37 = arith.constant 1.000000e+00 : f32
      %116 = vector.broadcast %cst_37 : f32 to vector<8x96xf32>
      %117 = arith.addf %116, %115 : vector<8x96xf32>
      %118 = arith.divf %116, %117 : vector<8x96xf32>
      %119 = vector.extract_strided_slice %112 {offsets = [0, 96], sizes = [8, 32], strides = [1, 1]} : vector<8x128xf32> to vector<8x32xf32>
      %120 = math.tanh %119 : vector<8x32xf32>
      %121 = vector.extract_strided_slice %118 {offsets = [0, 0], sizes = [8, 32], strides = [1, 1]} : vector<8x96xf32> to vector<8x32xf32>
      %122 = vector.extract_strided_slice %118 {offsets = [0, 32], sizes = [8, 32], strides = [1, 1]} : vector<8x96xf32> to vector<8x32xf32>
      %123 = vector.extract_strided_slice %118 {offsets = [0, 64], sizes = [8, 32], strides = [1, 1]} : vector<8x96xf32> to vector<8x32xf32>
      %124 = arith.mulf %122, %98 : vector<8x32xf32>
      %125 = arith.mulf %121, %120 : vector<8x32xf32>
      %126 = arith.addf %124, %125 : vector<8x32xf32>
      %127 = math.tanh %126 : vector<8x32xf32>
      %128 = arith.mulf %123, %127 : vector<8x32xf32>
      %129 = arith.addi %3, %c3_i32 : i32
      %130 = vector.broadcast %129 : i32 to vector<8x1xi32>
      %131 = arith.cmpi eq, %19, %130 : vector<8x1xi32>
      %132 = vector.shape_cast %131 : vector<8x1xi1> to vector<8x1xi1>
      %133 = vector.broadcast %132 : vector<8x1xi1> to vector<8x32xi1>
      %134 = arith.select %133, %128, %106 : vector<8x32xi1>, vector<8x32xf32>
      %c4_i32_38 = arith.constant 4 : i32
      %c0_39 = arith.constant 0 : index
      %c0_40 = arith.constant 0 : index
      %135 = vector.load %arg10[%c0_39, %c0_40] : memref<8x32xf32, #tpu.memory_space<vmem>>, vector<8x32xf32>
      tpu.vector_store %arg10[%c0_39, %c0_40], %128 {strides = array<i32>} : memref<8x32xf32, #tpu.memory_space<vmem>>, vector<8x32xf32>,
      %c0_41 = arith.constant 0 : index
      %c0_42 = arith.constant 0 : index
      %136 = vector.load %arg11[%c0_41, %c0_42] : memref<8x32xf32, #tpu.memory_space<vmem>>, vector<8x32xf32>
      tpu.vector_store %arg11[%c0_41, %c0_42], %126 {strides = array<i32>} : memref<8x32xf32, #tpu.memory_space<vmem>>, vector<8x32xf32>,
      %c0_43 = arith.constant 0 : index
      %c0_44 = arith.constant 0 : index
      %137 = vector.load %arg8[%c0_43, %c0_44] : memref<8x32xf32, #tpu.memory_space<vmem>>, vector<8x32xf32>
      tpu.vector_store %arg8[%c0_43, %c0_44], %134 {strides = array<i32>} : memref<8x32xf32, #tpu.memory_space<vmem>>, vector<8x32xf32>,
    } else {
    }
    return
  }
  func.func @transform_0(%arg0: i32, %arg1: i32, %arg2: memref<1xi32, #tpu.memory_space<smem>>) -> (i32, i32, i32) {
    %c0_i32 = arith.constant 0 : i32
    %c0_i32_0 = arith.constant 0 : i32
    return %arg1, %arg0, %c0_i32 : i32, i32, i32
  }
  func.func @transform_1(%arg0: i32, %arg1: i32, %arg2: memref<1xi32, #tpu.memory_space<smem>>) -> (i32, i32) {
    %c0_i32 = arith.constant 0 : i32
    %c0_i32_0 = arith.constant 0 : i32
    return %arg0, %c0_i32 : i32, i32
  }
  func.func @transform_2(%arg0: i32, %arg1: i32, %arg2: memref<1xi32, #tpu.memory_space<smem>>) -> (i32, i32) {
    %c0_i32 = arith.constant 0 : i32
    %c0_i32_0 = arith.constant 0 : i32
    %c0_i32_1 = arith.constant 0 : i32
    return %c0_i32, %c0_i32_0 : i32, i32
  }
  func.func @transform_3(%arg0: i32, %arg1: i32, %arg2: memref<1xi32, #tpu.memory_space<smem>>) -> (i32, i32) {
    %c0_i32 = arith.constant 0 : i32
    %c0_i32_0 = arith.constant 0 : i32
    %c0_i32_1 = arith.constant 0 : i32
    return %c0_i32, %c0_i32_0 : i32, i32
  }
  func.func @transform_4(%arg0: i32, %arg1: i32, %arg2: memref<1xi32, #tpu.memory_space<smem>>) -> (i32, i32) {
    %c0_i32 = arith.constant 0 : i32
    %c0_i32_0 = arith.constant 0 : i32
    %c0_i32_1 = arith.constant 0 : i32
    return %c0_i32, %c0_i32_0 : i32, i32
  }
  func.func @transform_5(%arg0: i32, %arg1: i32, %arg2: memref<1xi32, #tpu.memory_space<smem>>) -> (i32, i32) {
    %c0_i32 = arith.constant 0 : i32
    %c0_i32_0 = arith.constant 0 : i32
    return %arg0, %c0_i32 : i32, i32
  }
}

</mosaic_0001>

<bundles_post_ra>
// kernel: tpu_custom_call.1
= control target key start
LH: loop header
LB: loop body
LE: loop exit
PB: predicated region body
PF: predicated region fallthrough
CT: control target
= control target key end

     0   :  { %s1400_s0 = inlined_call_operand.<no memory space> [shape: s32[1], index: 0, kind: input, shape index: {}]   ;;  %s1401_s1 = inlined_call_operand.hbm [shape: f32[8,8,32], index: 1, kind: input, shape index: {}]   ;;  %s1402_s2 = inlined_call_operand.vmem [shape: s32[8,1], index: 2, kind: input, shape index: {}]   ;;  %s1403_s3 = inlined_call_operand.hbm [shape: f32[32,128], index: 3, kind: input, shape index: {}]   ;;  %s1404_s4 = inlined_call_operand.hbm [shape: f32[32,128], index: 4, kind: input, shape index: {}]   ;;  %s1405_s5 = inlined_call_operand.vmem [shape: f32[1,128], index: 5, kind: input, shape index: {}]   ;;  %s1406_s6 = inlined_call_operand.hbm [shape: f32[8,32], index: 6, kind: output, shape index: {}]  }
   0x1   :  { %11 = sst [smem:[#allocation6]] %s1400_s0 }
   0x2   :  { %12 = vsyncpa [#allocation8], 0 }
   0x3   :  { %14 = vsyncpa [#allocation8 + $0x1], 0 }
   0x4   :  { %15 = vsyncpa [#allocation11], 0 }
   0x5   :  { %16 = vsyncpa [#allocation9], 0  ;;  %s1200_s23 = smov 0   ;;  %s1202_s24 = smov 0  }
   0x6   :  { %s1204_s25 = smov 0   ;;  %s1206_s26 = smov 0  }
   0x7   :  { %s1208_s27 = smov 0   ;;  %s1210_s28 = smov 0  }
   0x8 LB: > { %s1407_s0 = sadd.s32 4294967295, %s1150_s28   ;;  %p56_p0 = scmp.ne.s32.totalorder %s1134_s24, %s1130_s23  ;;  %s1150_s28 = sphi %s1210_s28, %s22_s28   ;;  %s1146_s27 = sphi %s1208_s27, %s1417_s27   ;;  %s1142_s26 = sphi %s1206_s26, %s1416_s26   ;;  %s1138_s25 = sphi %s1204_s25, %s1415_s25   ;;  %s1134_s24 = sphi %s1202_s24, %s1414_s24   ;;  %s1130_s23 = sphi %s1200_s23, %s1413_s23  }
   0x9   : > { %p1232_p1 = scmp.eq.s32.totalorder %s1407_s0, 0  ;;  %p807_p2 = scmp.ge.s32.totalorder %s1150_s28, 1 }
   0xa   : > { %p182_p3 = scmp.lt.s32.totalorder %s1150_s28, 3  ;;  %s200_s9 = sshll.u32 %s1403_s3, 4  ;;  %s201_s9 = int_to_ptr.hbm [resolvable:$true] %s200_s9 }
   0xb   : > { %p1240_p4 = por %p1232_p1, %p56_p0  ;;  %s1152_s11 = smov [#allocation10]  }
   0xc   : > { %p1247_p5 = pnand %p807_p2, %p182_p3  ;;  %s202_s12 = sshll.u32 %s1152_s11, 4  ;;  %s203_s12 = int_to_ptr.vmem [resolvable:$true] %s202_s12 }
   0xd   : > { %s214_s15 = sshll.u32 %s1404_s4, 4  ;;  %s1153_s16 = smov 128   ;;  %s215_s15 = int_to_ptr.hbm [resolvable:$true] %s214_s15 }
   0xe   : > { %p862_p6 = pneg %p1247_p5  ;;  %s1154_s17 = smov 8  }
   0xf   : > { %s1155_s18 = smov [#allocation12]   ;;  %s31_s20 = sadd.s32 1, %s1146_s27 }
  0x10   : > { %p863_p7 = pnand %p862_p6, %p1232_p1  ;;  %s216_s19 = sshll.u32 %s1155_s18, 4  ;;  %s217_s19 = int_to_ptr.vmem [resolvable:$true] %s216_s19 }
  0x11   : > { %s43_s21 = sadd.s32 1, %s1138_s25  ;;  %p32_p8 = scmp.ge.s32.totalorder %s31_s20, 2 }
  0x12   : > { %865 = dma.hbm_to_vmem [thread:$0]  (!%p863_p7), %s201_s9, 512, %s203_s12, [#allocation11], %s1153_s16, %s1153_s16, %s1154_s17  }
  0x13   : > { %868 = dma.hbm_to_vmem [thread:$0]  (!%p863_p7), %s215_s15, 512, %s217_s19, [#allocation11], %s1153_s16, %s1153_s16, %s1154_s17  }
  0x14   : > { %p50_p9 = scmp.ne.s32.totalorder %s1138_s25, %s1134_s24  ;;  %p51_p10 = scmp.eq.s32.totalorder %s1150_s28, 0 }
  0x15   : > { %p875_p11 = scmp.lt.s32.totalorder %s1150_s28, 2  ;;  %s1419_s20 = smov (%p32_p8, %s31_s20), 0 }
  0x16   : > { %p1272_p12 = por %p51_p10, %p50_p9  ;;  %s233_s23 = sand.u32 1, %s1138_s25  }
  0x17   : > { %s38_s7 = ssub.s32 %s1146_s27, %s1419_s20  ;;  %s812_s8 = sshll.u32 %s233_s23, 5 }
  0x18   : > { %p41_p13 = scmp.eq.s32.totalorder %s38_s7, 0  ;;  %s839_s9 = sshll.u32 %s1146_s27, 5 }
  0x19   : > { %s243_s14 = scalar_lea.hbm %s1401_s1, %s839_s9  ;;  %s237_s15 = scalar_lea.vmem [#allocation7], %s812_s8 }
  0x1a   : > { %s1281_s11 = scalar_select %p41_p13, %s1138_s25, %s43_s21  }
  0x1b   : > { %s246_s18 = sshll.u32 %s237_s15, 4  ;;  %s244_s19 = sshll.u32 %s243_s14, 4  ;;  %s247_s18 = int_to_ptr.vmem [resolvable:$true] %s246_s18  ;;  %s245_s19 = int_to_ptr.hbm [resolvable:$true] %s244_s19 }
  0x1c   : > { %p870_p0 = pnand %p875_p11, %p1272_p12  ;;  %s234_s0 = scalar_lea.sflag [#allocation8], %s233_s23 }
  0x1d   : > { %258 = sbr.rel (%p1247_p5) target bundleno = 2379 (0x94b), region = 40  ;;  %s260_s21 = sand.u32 (!%p1247_p5), 1, %s1134_s24  }
  0x1e   : > { %872 = dma.hbm_to_vmem [thread:$0]  (!%p870_p0), %s245_s19, 512, %s247_s18, %s234_s0, %s1153_s16, %s1153_s16, %s1154_s17  }
  0x1f   : > { %s816_s7 = sshll.u32 (!%p1247_p5), %s260_s21, 5  ;;  %s261_s8 = scalar_lea.sflag (!%p1247_p5), [#allocation8], %s260_s21 }
  0x20   : > { %s1296_s9 = scalar_lea.vmem (!%p1247_p5), [#allocation7], %s816_s7 }
  0x22   : > { %1117 = dma.done.wait (%p1240_p4), %s261_s8, 512  }
  0x23   : > { %1119 = vsyncadd (%p1240_p4), %s261_s8, 4294966784 }
  0x24   : > { %1121 = dma.done.wait (%p1232_p1), [#allocation11], 1024  }
  0x25   : > { %1123 = vsyncadd (%p1232_p1), [#allocation11], 4294966272  ;;  %p819_p2 = scmp.ne.s32.totalorder %s1142_s26, 0 }
  0x27   : > { %309 = sbr.rel (%p819_p2) target bundleno = 48 (0x30), region = 56 }
  0x2c   : > { %vm310_vm0 = vcmask 261120   ;;  %v1156_v0 = vmov 0.0  }
  0x2d   : > { %311 = vst.msk [vmem:[#allocation3] sm:$0xff] %vm310_vm0, %v1156_v0 }
  0x2e   : > { %312 = vst.msk [vmem:[#allocation4] sm:$0xff] %vm310_vm0, %v1156_v0 }
  0x2f   : > { %313 = vst.msk [vmem:[#allocation13] sm:$0xff] %vm310_vm0, %v1156_v0 }
  0x30 PF: > { %s1308_s0 = sshll.u32 %s1142_s26, 2  ;;  %s315_s30 = sld [smem:[#allocation6]] }
  0x36   : > { %p821_p3 = scmp.ge.s32.totalorder %s1308_s0, %s315_s30 }
  0x37   : > { %s1157_s10 = smov (!%p821_p3), 32   ;;  %s1158_s16 = smov (!%p821_p3), 64  }
  0x38   : > { %319 = sbr.rel (%p821_p3) target bundleno = 2373 (0x945), region = 60  ;;  %s601_s23 = sadd.s32 (!%p821_p3), 2, %s1308_s0 }
  0x39   : > { %s674_s12 = sadd.s32 (!%p821_p3), 3, %s1308_s0  ;;  %s528_s13 = sadd.s32 (!%p821_p3), 1, %s1308_s0 }
  0x3a   : > { %s1160_s14 = smov (!%p821_p3), 96  }
  0x3d   : > { %v327_v1 = vld [vmem:[#allocation10 + $0x18] sm:$0xff]  ;;  %v326_v2 = vld [vmem:[#allocation10 + $0x10] sm:$0xff]  ;;  %v325_v5 = vld [vmem:[#allocation10 + $0x8] sm:$0xff]  ;;  %vm332_vm1 = vcmask 261120  }
  0x3e   : > { %v381_v3 = vld [vmem:[#allocation12 + $0x18] sm:$0xff]  ;;  %357 = vmatpush.msra.mxu0 %v327_v1  ;;  %v380_v4 = vld [vmem:[#allocation12 + $0x10] sm:$0xff]  ;;  %v379_v6 = vld [vmem:[#allocation12 + $0x8] sm:$0xff]  ;;  %840 = vmatpush.msra.mxu2 %v327_v1 }
  0x3f   : > { %403 = vmatpush.msra.mxu1 %v381_v3  ;;  %841 = vmatpush.msra.mxu3 %v327_v1  ;;  %v324_v7 = vld [vmem:[#allocation10] sm:$0xff]  ;;  %v384_v10 = vld [vmem:[#allocation3] sm:$0xff]  ;;  %v385_v17 = vld [vmem:[#allocation4] sm:$0xff] }
  0x40   : > { %358 = vmatpush.msra.mxu0 %v326_v2  ;;  %v378_v8 = vld [vmem:[#allocation12] sm:$0xff]  ;;  %842 = vmatpush.msra.mxu2 %v326_v2  ;;  %v1317_v11 = vld [vmem:[%s1405_s5] ss:$0 sm:$0xff]  ;;  %v321_v41 = vld [vmem:[%s1296_s9 + $0x8] sm:$0xff] }
  0x41   : > { %404 = vmatpush.msra.mxu1 %v380_v4  ;;  %843 = vmatpush.msra.mxu3 %v326_v2  ;;  %v320_v9 = vld [vmem:[%s1296_s9] sm:$0xff]  ;;  %v322_v38 = vld [vmem:[%s1296_s9 + $0x10] sm:$0xff] }
  0x42   : > { %359 = vmatpush.msra.mxu0 %v325_v5  ;;  %844 = vmatpush.msra.mxu2 %v325_v5 }
  0x43   : > { %405 = vmatpush.msra.mxu1 %v379_v6  ;;  %845 = vmatpush.msra.mxu3 %v325_v5 }
  0x44   : > { %360 = vmatpush.msra.mxu0 %v324_v7  ;;  %846 = vmatpush.msra.mxu2 %v324_v7 }
  0x45   : > { %406 = vmatpush.msra.mxu1 %v378_v8  ;;  %822 = vmatmul.msk.f32.vlgmr.msra.gmra.mxu0 %vm332_vm1, %v320_v9 }
  0x46   : > { %827 = vmatmul.msk.f32.vlgmr.msra.gmra.mxu1 %vm332_vm1, %v384_v10  ;;  %847 = vmatpush.msra.mxu3 %v324_v7 }
  0x47   : > { %483 = vmatpush.msrb.mxu2 %v381_v3  ;;  %629 = vmatpush.msrb.mxu1 %v381_v3 }
  0x48   : > { %556 = vmatpush.msrb.mxu3 %v381_v3  ;;  %824 = vmatmul.msk.f32.vlgmr.msra.gmra.mxu2 %vm332_vm1, %v322_v38  ;;  %v452_v38 = vstv %s1308_s0 }
  0x49   : > { %484 = vmatpush.msrb.mxu2 %v380_v4  ;;  %630 = vmatpush.msrb.mxu1 %v380_v4 }
  0x4a   : > { %557 = vmatpush.msrb.mxu3 %v380_v4  ;;  %v323_v4 = vld [vmem:[%s1296_s9 + $0x18] sm:$0xff] }
  0x4b   : > { %485 = vmatpush.msrb.mxu2 %v379_v6  ;;  %631 = vmatpush.msrb.mxu1 %v379_v6 }
  0x4c   : > { %558 = vmatpush.msrb.mxu3 %v379_v6 }
  0x4d   : > { %486 = vmatpush.msrb.mxu2 %v378_v8  ;;  %632 = vmatpush.msrb.mxu1 %v378_v8 }
  0x4e   : > { %559 = vmatpush.msrb.mxu3 %v378_v8  ;;  %823 = vmatmul.msk.f32.gmra.mxu0 %vm332_vm1, %v321_v41 }
  0x4f   : > { %825 = vmatmul.msk.f32.vlgmr.msra.gmra.mxu3 %vm332_vm1, %v323_v4 }
  0xc2   : > { %v362_v12 = vpop.f32.mrf.mxu0 }
  0xc3   : > { %v408_v13 = vpop.f32.mrf.mxu1  ;;  %v363_v14 = vadd.f32 %v1317_v11, %v362_v12 }
  0xc5   : > { %v409_v15 = vadd.f32 %v408_v13, %v363_v14 }
  0xc7   : > { %942 = vtanh.f32 %v409_v15  ;;  %v828_v18 = vmul.f32 -1.442695, %v409_v15 }
  0xc9   : > { %944 = vpow2.f32 %v828_v18 }
  0xcb   : > { %v368_v43 = vpop.f32.mrf.mxu2  ;;  %v365_v44 = vpop.f32.mrf.mxu0 }
  0xcc   : > { %v366_v45 = vadd.f32 %v1317_v11, %v365_v44  ;;  %v369_v9 = vadd.f32 %v1317_v11, %v368_v43 }
  0xcd   : > { %v943_v16 = vpop.eup %942 }
  0xce   : > { %437 = vrot.lane.b32.xlu0 %v943_v16, %s1157_s10 }
  0xcf   : > { %v945_v19 = vpop.eup %944 }
  0xd0   : > { %v414_v20 = vadd.f32 1.0, %v945_v19 }
  0xd2   : > { %946 = vrcp.f32 %v414_v20  ;;  %v426_v26 = vand.u32 2147483648, %v414_v20  ;;  %vm420_vm3 = vweird.f32 %v414_v20  ;;  %v424_v27 = vand.u32 2147483647, %v414_v20  ;;  %v371_v8 = vpop.f32.mrf.mxu3 }
  0xd4   : > { %v427_v29 = vor.u32 1.1754944e-38, %v426_v26  ;;  %vm425_vm5 = vcmp.eq.f32.partialorder %v424_v27, 8.507059e+37 }
  0xd6   : > { %432 = vrot.lane.b32.xlu0 %v385_v17, %s1157_s10 }
  0xd8   : > { %v947_v21 = vpop.eup %946 }
  0xd9   : > { %v416_v22 = vmul.f32 %v947_v21, %v414_v20  ;;  %vm421_vm2 = vweird.f32 %v947_v21 }
  0xda   : > { %vm422_vm4 = vmor %vm420_vm3, %vm421_vm2 }
  0xdb   : > { %v417_v23 = vsub.f32 1.0, %v416_v22 }
  0xdd   : > { %v418_v24 = vmul.f32 %v947_v21, %v417_v23 }
  0xdf   : > { %v419_v25 = vadd.f32 %v947_v21, %v418_v24 }
  0xe1   : > { %v423_v28 = vsel %vm422_vm4, %v947_v21, %v419_v25 }
  0xe2   : > { %v428_v31 = vsel %vm425_vm5, %v427_v29, %v423_v28 }
 0x140   : > { %v438_v30 = vpop.permute.xlu0 %437 }
 0x141   : > { %v440_v32 = vmul.f32 %v438_v30, %v428_v31 }
 0x143   : > { %442 = vrot.lane.b32.xlu1 %v440_v32, %s1157_s10 }
 0x148   : > { %v433_v33 = vpop.permute.xlu0 %432 }
 0x149   : > { %v435_v34 = vmul.f32 %v433_v33, %v428_v31 }
 0x1b5   : > { %v443_v35 = vpop.permute.xlu1 %442 }
 0x1b6   : > { %v445_v36 = vadd.f32 %v443_v35, %v435_v34 }
 0x1b8   : > { %948 = vtanh.f32 %v445_v36 }
 0x1be   : > { %v949_v37 = vpop.eup %948 }
 0x1bf   : > { %448 = vrot.lane.b32.xlu1 %v949_v37, %s1157_s10 }
 0x231   : > { %v449_v39 = vpop.permute.xlu1 %448 }
 0x232   : > { %v1326_v40 = vmul.f32 %v449_v39, %v428_v31  ;;  %v1159_v39 = vmov 0  }
 0x233   : > { %938 = vset.pattern.permute.xlu0 %v1159_v39  ;;  %940 = vset.pattern.permute.xlu1 %v1159_v39 }
 0x234   : > { %467 = vrot.lane.b32.xlu2 %v1326_v40, %s1158_s16 }
 0x235   : > { %939 = vset.pattern.permute.xlu2 %v1159_v39 }
 0x28e   : > { %v468_v42 = vpop.permute.xlu2 %467 }
 0x28f   : > { %829 = vmatmul.msk.f32.vlgmr.msrb.gmra.mxu2 %vm332_vm1, %v468_v42  ;;  %v372_v42 = vadd.f32 %v1317_v11, %v371_v8 }
 0x312   : > { %v488_v46 = vpop.f32.mrf.mxu2 }
 0x313   : > { %v489_v47 = vadd.f32 %v488_v46, %v366_v45  ;;  %v386_v46 = vld [vmem:[#allocation13] sm:$0xff] }
 0x315   : > { %950 = vtanh.f32 %v489_v47  ;;  %v830_v49 = vmul.f32 -1.442695, %v489_v47  ;;  %v602_v47 = vstv %s601_s23 }
 0x317   : > { %952 = vpow2.f32 %v830_v49 }
 0x31b   : > { %v951_v48 = vpop.eup %950 }
 0x31c   : > { %513 = vrot.lane.b32.xlu2 %v951_v48, %s1157_s10 }
 0x31d   : > { %v953_v50 = vpop.eup %952 }
 0x31e   : > { %v494_v51 = vadd.f32 1.0, %v953_v50 }
 0x320   : > { %954 = vrcp.f32 %v494_v51  ;;  %v506_v57 = vand.u32 2147483648, %v494_v51  ;;  %vm500_vm7 = vweird.f32 %v494_v51  ;;  %v504_v58 = vand.u32 2147483647, %v494_v51 }
 0x322   : > { %v507_v60 = vor.u32 1.1754944e-38, %v506_v57  ;;  %vm505_vm9 = vcmp.eq.f32.partialorder %v504_v58, 8.507059e+37 }
 0x326   : > { %v955_v52 = vpop.eup %954 }
 0x327   : > { %v496_v53 = vmul.f32 %v955_v52, %v494_v51  ;;  %vm501_vm6 = vweird.f32 %v955_v52 }
 0x328   : > { %vm502_vm8 = vmor %vm500_vm7, %vm501_vm6 }
 0x329   : > { %v497_v54 = vsub.f32 1.0, %v496_v53 }
 0x32b   : > { %v498_v55 = vmul.f32 %v955_v52, %v497_v54 }
 0x32d   : > { %v499_v56 = vadd.f32 %v955_v52, %v498_v55 }
 0x32f   : > { %v503_v59 = vsel %vm502_vm8, %v955_v52, %v499_v56  ;;  %v675_v52 = vstv %s674_s12 }
 0x330   : > { %v508_v62 = vsel %vm505_vm9, %v507_v60, %v503_v59 }
 0x331   : > { %v511_v0 = vmul.f32 %v508_v62, %v445_v36  ;;  %v382_v36 = vld [vmem:[%s1402_s2] sm:$0xff] }
 0x332   : > { %v826_v37 = vadd.s32 4294967295, %v382_v36 }
 0x334   : > { %vm453_vm14 = vcmp.eq.s32.totalorder %v826_v37, %v452_v38  ;;  %vm603_vm15 = vcmp.eq.s32.totalorder %v826_v37, %v602_v47  ;;  %vm676_vm0 = vcmp.eq.s32.totalorder %v826_v37, %v675_v52 }
 0x335   : > { %v454_v41 = vsel %vm453_vm14, 1, %v1159_v39  ;;  %v604_v48 = vsel %vm603_vm15, 1, %v1159_v39  ;;  %v677_v54 = vsel %vm676_vm0, 1, %v1159_v39 }
 0x376   : > { %v514_v61 = vpop.permute.xlu2 %513 }
 0x377   : > { %v516_v63 = vmul.f32 %v514_v61, %v508_v62 }
 0x379   : > { %518 = vrot.lane.b32.xlu0 %v516_v63, %s1157_s10 }
 0x3eb   : > { %v519_v1 = vpop.permute.xlu0 %518 }
 0x3ec   : > { %v521_v2 = vadd.f32 %v519_v1, %v511_v0  ;;  %v529_v1 = vstv %s528_s13 }
 0x3ed   : > { %vm530_vm6 = vcmp.eq.s32.totalorder %v826_v37, %v529_v1 }
 0x3ee   : > { %956 = vtanh.f32 %v521_v2 }
 0x3f4   : > { %v957_v3 = vpop.eup %956 }
 0x3f5   : > { %524 = vrot.lane.b32.xlu1 %v957_v3, %s1157_s10 }
 0x467   : > { %v525_v5 = vpop.permute.xlu1 %524 }
 0x468   : > { %v1339_v6 = vmul.f32 %v525_v5, %v508_v62 }
 0x46a   : > { %540 = vrot.lane.b32.xlu2 %v1339_v6, %s1158_s16 }
 0x4c4   : > { %v541_v7 = vpop.permute.xlu2 %540 }
 0x4c5   : > { %831 = vmatmul.msk.f32.vlgmr.msrb.gmra.mxu3 %vm332_vm1, %v541_v7 }
 0x548   : > { %v561_v10 = vpop.f32.mrf.mxu3 }
 0x549   : > { %v562_v12 = vadd.f32 %v561_v10, %v369_v9 }
 0x54b   : > { %958 = vtanh.f32 %v562_v12  ;;  %v832_v14 = vmul.f32 -1.442695, %v562_v12 }
 0x54d   : > { %960 = vpow2.f32 %v832_v14 }
 0x551   : > { %v959_v13 = vpop.eup %958 }
 0x552   : > { %586 = vrot.lane.b32.xlu0 %v959_v13, %s1157_s10 }
 0x553   : > { %v961_v15 = vpop.eup %960 }
 0x554   : > { %v567_v16 = vadd.f32 1.0, %v961_v15 }
 0x556   : > { %962 = vrcp.f32 %v567_v16  ;;  %v579_v22 = vand.u32 2147483648, %v567_v16  ;;  %vm573_vm11 = vweird.f32 %v567_v16  ;;  %v577_v23 = vand.u32 2147483647, %v567_v16 }
 0x558   : > { %v580_v25 = vor.u32 1.1754944e-38, %v579_v22  ;;  %vm578_vm13 = vcmp.eq.f32.partialorder %v577_v23, 8.507059e+37 }
 0x55c   : > { %v963_v17 = vpop.eup %962 }
 0x55d   : > { %v569_v18 = vmul.f32 %v963_v17, %v567_v16  ;;  %vm574_vm10 = vweird.f32 %v963_v17 }
 0x55e   : > { %vm575_vm12 = vmor %vm573_vm11, %vm574_vm10 }
 0x55f   : > { %v570_v19 = vsub.f32 1.0, %v569_v18 }
 0x561   : > { %v571_v20 = vmul.f32 %v963_v17, %v570_v19 }
 0x563   : > { %v572_v21 = vadd.f32 %v963_v17, %v571_v20 }
 0x565   : > { %v576_v24 = vsel %vm575_vm12, %v963_v17, %v572_v21 }
 0x566   : > { %v581_v27 = vsel %vm578_vm13, %v580_v25, %v576_v24 }
 0x567   : > { %v584_v29 = vmul.f32 %v581_v27, %v521_v2  ;;  %v531_v2 = vsel %vm530_vm6, 1, %v1159_v39 }
 0x5c4   : > { %v587_v26 = vpop.permute.xlu0 %586 }
 0x5c5   : > { %v589_v28 = vmul.f32 %v587_v26, %v581_v27 }
 0x5c7   : > { %591 = vrot.lane.b32.xlu1 %v589_v28, %s1157_s10 }
 0x639   : > { %v592_v30 = vpop.permute.xlu1 %591 }
 0x63a   : > { %v1347_v31 = vadd.f32 %v592_v30, %v584_v29 }
 0x63c   : > { %964 = vtanh.f32 %v1347_v31 }
 0x642   : > { %v965_v32 = vpop.eup %964 }
 0x643   : > { %597 = vrot.lane.b32.xlu2 %v965_v32, %s1157_s10 }
 0x69d   : > { %v598_v33 = vpop.permute.xlu2 %597 }
 0x69e   : > { %v1351_v34 = vmul.f32 %v598_v33, %v581_v27 }
 0x6a0   : > { %613 = vrot.lane.b32.xlu0 %v1351_v34, %s1158_s16 }
 0x6a8   : > { %456 = vperm.xlu0 %938, %v454_v41  }
 0x6b0   : > { %679 = vperm.xlu0 %938, %v677_v54  }
 0x712   : > { %v614_v35 = vpop.permute.xlu0 %613 }
 0x713   : > { %833 = vmatmul.msk.f32.vlgmr.msrb.gmra.mxu1 %vm332_vm1, %v614_v35 }
 0x71a   : > { %v457_v9 = vpop.permute.xlu0 %456 }
 0x71b   : > { %vm458_vm7 = vcmp.eq.s32.totalorder %v457_v9, 1 }
 0x722   : > { %v680_v15 = vpop.permute.xlu0 %679 }
 0x723   : > { %vm681_vm10 = vcmp.eq.s32.totalorder %v680_v15, 1 }
 0x790   : > { %v634_v43 = vpop.f32.mrf.mxu1 }
 0x791   : > { %v635_v44 = vadd.f32 %v634_v43, %v372_v42 }
 0x793   : > { %966 = vtanh.f32 %v635_v44  ;;  %v834_v49 = vmul.f32 -1.442695, %v635_v44 }
 0x795   : > { %968 = vpow2.f32 %v834_v49 }
 0x799   : > { %v967_v45 = vpop.eup %966 }
 0x79a   : > { %659 = vrot.lane.b32.xlu1 %v967_v45, %s1157_s10 }
 0x79b   : > { %v969_v50 = vpop.eup %968 }
 0x79c   : > { %v640_v51 = vadd.f32 1.0, %v969_v50 }
 0x79e   : > { %970 = vrcp.f32 %v640_v51  ;;  %v652_v58 = vand.u32 2147483648, %v640_v51  ;;  %vm646_vm3 = vweird.f32 %v640_v51  ;;  %v650_v59 = vand.u32 2147483647, %v640_v51 }
 0x7a0   : > { %v653_v61 = vor.u32 1.1754944e-38, %v652_v58  ;;  %vm651_vm5 = vcmp.eq.f32.partialorder %v650_v59, 8.507059e+37 }
 0x7a2   : > { %460 = vrot.lane.b32.xlu1 %v386_v46, %s1158_s16 }
 0x7a4   : > { %v971_v11 = vpop.eup %970 }
 0x7a5   : > { %v642_v53 = vmul.f32 %v971_v11, %v640_v51  ;;  %vm647_vm2 = vweird.f32 %v971_v11 }
 0x7a6   : > { %vm648_vm4 = vmor %vm646_vm3, %vm647_vm2 }
 0x7a7   : > { %v643_v55 = vsub.f32 1.0, %v642_v53 }
 0x7a9   : > { %v644_v56 = vmul.f32 %v971_v11, %v643_v55 }
 0x7aa   : > { %606 = vperm.xlu1 %940, %v604_v48  }
 0x7ab   : > { %v645_v57 = vadd.f32 %v971_v11, %v644_v56 }
 0x7ad   : > { %v649_v60 = vsel %vm648_vm4, %v971_v11, %v645_v57 }
 0x7ae   : > { %v654_v63 = vsel %vm651_vm5, %v653_v61, %v649_v60 }
 0x7af   : > { %v657_v3 = vmul.f32 %v654_v63, %v1347_v31 }
 0x80c   : > { %v660_v62 = vpop.permute.xlu1 %659 }
 0x80d   : > { %v662_v0 = vmul.f32 %v660_v62, %v654_v63 }
 0x80f   : > { %664 = vrot.lane.b32.xlu2 %v662_v0, %s1157_s10 }
 0x814   : > { %v461_v8 = vpop.permute.xlu1 %460 }
 0x815   : > { %v463_v13 = vsel %vm458_vm7, %v1326_v40, %v461_v8 }
 0x817   : > { %533 = vperm.xlu2 %939, %v531_v2  }
 0x81c   : > { %v607_v12 = vpop.permute.xlu1 %606 }
 0x81d   : > { %vm608_vm9 = vcmp.eq.s32.totalorder %v607_v12, 1 }
 0x869   : > { %v665_v4 = vpop.permute.xlu2 %664 }
 0x86a   : > { %v667_v5 = vadd.f32 %v665_v4, %v657_v3 }
 0x86c   : > { %972 = vtanh.f32 %v667_v5 }
 0x871   : > { %v534_v10 = vpop.permute.xlu2 %533 }
 0x872   : > { %v973_v7 = vpop.eup %972  ;;  %vm535_vm8 = vcmp.eq.s32.totalorder %v534_v10, 1 }
 0x873   : > { %670 = vrot.lane.b32.xlu2 %v973_v7, %s1157_s10  ;;  %v536_v14 = vsel %vm535_vm8, %v1339_v6, %v463_v13 }
 0x874   : > { %v609_v18 = vsel %vm608_vm9, %v1351_v34, %v536_v14 }
 0x87b   : > { %689 = vrot.lane.b32.xlu2 %v667_v5, %s1160_s14 }
 0x8cd   : > { %v671_v16 = vpop.permute.xlu2 %670 }
 0x8ce   : > { %v673_v17 = vmul.f32 %v671_v16, %v654_v63 }
 0x8d0   : > { %684 = vrot.lane.b32.xlu1 %v673_v17, %s1158_s16  ;;  %v682_v19 = vsel %vm681_vm10, %v673_v17, %v609_v18 }
 0x8d1   : > { %694 = vrot.lane.b32.xlu0 %v682_v19, %s1158_s16 }
 0x8d5   : > { %v690_v20 = vpop.permute.xlu2 %689 }
 0x8d6   : > { %692 = vst.msk [vmem:[#allocation4] sm:$0xff] %vm332_vm1, %v690_v20 }
 0x942   : > { %v685_v21 = vpop.permute.xlu1 %684 }
 0x943   : > { %687 = vst.msk [vmem:[#allocation3] sm:$0xff] %vm332_vm1, %v685_v21  ;;  %v695_v40 = vpop.permute.xlu0 %694 }
 0x944   : > { %697 = vst.msk [vmem:[#allocation13] sm:$0xff] %vm332_vm1, %v695_v40 }
 0x945 PF: > { %s1412_s15 = sadd.s32 4294967295, %s1150_s28   ;;  %s708_s21 = sshll.u32 %s1406_s6, 4  ;;  %s709_s21 = int_to_ptr.hbm [resolvable:$true] %s708_s21 }
 0x946   : > { %p878_p1 = scmp.eq.s32.totalorder %s1412_s15, 1  ;;  %s1161_s7 = smov [#allocation13]  }
 0x947   : > { %s706_s8 = sshll.u32 %s1161_s7, 4  ;;  %s707_s8 = int_to_ptr.vmem [resolvable:$true] %s706_s8 }
 0x948   : > { %859 = dma.vmem_to_hbm [thread:$0]  (%p878_p1), %s707_s8, 128, %s709_s21, [#allocation9]  }
 0x949   : > { %1125 = dma.done.wait (%p878_p1), [#allocation9], 128  }
 0x94a   : > { %1127 = vsyncadd (%p878_p1), [#allocation9], 4294967168 }
 0x94b PF: > { %s22_s28 = sadd.s32 1, %s1150_s28   ;;  %s1413_s23 = smov %s1134_s24 }
 0x94c   : > { %p19_p4 = scmp.ge.s32.totalorder %s22_s28, 4   ;;  %s1414_s24 = smov %s1138_s25 }
 0x94d   : > { %s1415_s25 = smov %s1281_s11  ;;  %s1416_s26 = smov %s1146_s27 }
 0x94e   : > { %s1417_s27 = smov %s1419_s20  ;;  %21 = sbr.rel (!%p19_p4) target bundleno = 8 (0x8), region = 100 }
 0x953   :  { %722 = vsyncpa [#allocation8], 1 }
 0x954   :  { %724 = vsyncpa [#allocation8 + $0x1], 1 }
 0x955   :  { %725 = vsyncpa [#allocation11], 1 }
 0x956   :  { %726 = vsyncpa [#allocation9], 1 }
 0x957   :  { %728 = vsyncpa [#allocation9 + $0x1], 1 }

</bundles_post_ra>
